<compile_context>
chip_gen: v7x
topology: tpu7x:2x2x1
jax: 0.10.0
libtpu: 0.0.40
codegen_flags: <defaults>
</compile_context>

<pallas_src>
import functools

import jax
import jax.numpy as jnp
from jax import lax
from jax.experimental import pallas as pl
from jax.experimental.pallas import tpu as pltpu

RIDGE = 0.01
_MIB = 1024 * 1024
STREAM_BUDGET_BYTES = 24 * _MIB   # cap for double-buffered streamed tiles per kernel
MAX_TILE_D = 1 << 16              # keep single-tile lane width sane


def _pick_tile_d(t, d):
    """Largest multiple-of-128 D tile whose double-buffered in+out slabs fit the budget."""
    bytes_per_lane = 4 * 4 * max(t, 8)            # 2 in-bufs + 2 out-bufs of f32 rows
    cap = max(STREAM_BUDGET_BYTES // bytes_per_lane, 256)
    cap = min(cap, MAX_TILE_D)
    if d <= cap:
        return ((d + 127) // 128) * 128           # full (padded) row in one tile
    return (cap // 128) * 128


def _pad_features(x, tile_d):
    """Zero-pad the feature axis to a multiple of tile_d (zero columns contribute
    nothing to the Gram and produce zero reconstruction columns, sliced off later)."""
    d = x.shape[-1]
    d_pad = ((d + tile_d - 1) // tile_d) * tile_d
    if d_pad == d:
        return x
    return jnp.pad(x, ((0, 0), (0, d_pad - d)))


def _vmem_limit(streamed_bytes):
    # derived from the actual streamed footprint; clamped to stay valid on v7x
    # (64 MiB VMEM per TC) while not dropping below a comfortable floor.
    return int(min(max(2 * streamed_bytes + 4 * _MIB, 32 * _MIB), 64 * _MIB))


# ---------------------------------------------------------------------------
# Pallas kernels (the only two passes over the big D axis)
# ---------------------------------------------------------------------------

def _gram_kernel(x_ref, g_ref):
    # G += X_tile X_tile^T, reduced over the D-tile grid axis; G stays VMEM-resident.
    @pl.when(pl.program_id(0) == 0)
    def _():
        g_ref[...] = jnp.zeros_like(g_ref)

    xt = x_ref[...]
    g_ref[...] += lax.dot_general(xt, xt, (((1,), (1,)), ((), ())),
                                  preferred_element_type=jnp.float32)


def full_gram(x, tile_d):
    """G = X X^T (T, T) in one streaming pass over the big feature axis D."""
    t, d = x.shape
    nd = d // tile_d
    streamed = 2 * t * tile_d * 4
    return pl.pallas_call(
        _gram_kernel,
        out_shape=jax.ShapeDtypeStruct((t, t), jnp.float32),
        grid=(nd,),
        in_specs=[pl.BlockSpec((t, tile_d), lambda k: (0, k))],
        out_specs=pl.BlockSpec((t, t), lambda k: (0, 0)),
        compiler_params=pltpu.CompilerParams(
            dimension_semantics=("arbitrary",),
            vmem_limit_bytes=_vmem_limit(streamed)),
    )(x)


def _rowmix_kernel(w_ref, x_ref, o_ref):
    # O_tile = W @ X_tile : (T, T) @ (T, TILE_D) -> (T, TILE_D); lane-dense store.
    o_ref[...] = jnp.dot(w_ref[...], x_ref[...], preferred_element_type=jnp.float32)


def row_mix(w, x, tile_d):
    """recon = W @ X, streamed lane-dense over D tiles (the only other pass over X)."""
    t_out, t_in = w.shape
    d = x.shape[1]
    nd = d // tile_d
    streamed = 2 * (t_in + t_out) * tile_d * 4
    return pl.pallas_call(
        _rowmix_kernel,
        out_shape=jax.ShapeDtypeStruct((t_out, d), jnp.float32),
        grid=(nd,),
        in_specs=[pl.BlockSpec((t_out, t_in), lambda k: (0, 0)),
                  pl.BlockSpec((t_in, tile_d), lambda k: (0, k))],
        out_specs=pl.BlockSpec((t_out, tile_d), lambda k: (0, k)),
        compiler_params=pltpu.CompilerParams(
            dimension_semantics=("parallel",),
            vmem_limit_bytes=_vmem_limit(streamed)),
    )(w, x)


# ---------------------------------------------------------------------------
# Tiny (F x F) / (T x T) linear algebra (plain JAX glue; negligible cost)
# ---------------------------------------------------------------------------

def _lower_chol_inv(g):
    """L^{-1} with L = cholesky(G) (lower), i.e. R^{-T} with R upper, via triangular solve."""
    # TODO(synk): the tiny (F,F) Cholesky / triangular solve between Frechet iterations
    # stays in plain JAX; an in-kernel unrolled Cholesky would remove the remaining
    # XLA-side ops between the two pallas_calls.
    n = g.shape[-1]
    l = jnp.linalg.cholesky(g)
    eye = jnp.eye(n, dtype=g.dtype)
    return lax.linalg.triangular_solve(l, eye, left_side=True, lower=True)


def _dot(a, b):
    # tiny matmuls: force full f32 accuracy so the Cholesky chain stays stable
    return jnp.dot(a, b, precision=lax.Precision.HIGHEST)


# ---------------------------------------------------------------------------
# Module-level forward
# ---------------------------------------------------------------------------

def _forward(x, weights, weight_reference, num_blocks):
    t, d = x.shape
    nb = num_blocks
    bs = t // nb                   # block_size = int(T / num_blocks), as in PyTorch
    f = bs                         # subspace width
    # Trailing ragged frames (rows >= nb*bs) never enter the subspace fit (their
    # coefficient columns stay zero) but ARE projected/reconstructed, like the original.

    tile_d = _pick_tile_d(t, d)
    xp = _pad_features(x.astype(jnp.float32), tile_d)     # (T, D_pad)

    # ---- single full pass over D: G = X X^T --------------------------------------
    g_full = full_gram(xp, tile_d)                         # (T, T)

    eye_f = jnp.eye(f, dtype=jnp.float32)

    # ---- per-block Cholesky-orthonormalization as (F, T) coefficient matrices ----
    # U_b rows = M_b @ X_b with M_b = chol(X_b X_b^T + ridge*I)^{-1}; the block Gram
    # is just a diagonal block of G_full, so no extra HBM pass is needed.
    cu = []
    for b in range(nb):
        gb = g_full[b * bs:(b + 1) * bs, b * bs:(b + 1) * bs] + RIDGE * eye_f
        mb = _lower_chol_inv(gb)                                            # (F, F)
        cu.append(jnp.zeros((f, t), jnp.float32).at[:, b * bs:(b + 1) * bs].set(mb))

    # ---- weighted incremental Grassmann (Frechet) mean on coefficients -----------
    # TODO(synk): ops.weightedIterativeStatistic / ops.weightedFrechetMeanUpdate are not
    # defined in the provided source; this is the same chordal incremental mean with
    # Cholesky re-orthonormalization stand-in as before, now run entirely on tiny
    # (F, T)/(F, F) matrices via G_full (no per-iteration pass over X).
    if nb == 1:
        c_b = cu[0]
        m_final = eye_f
    else:
        w = weights[0]
        c_b = (1.0 - w) * cu[0] + w * cu[1]
        g_b = _dot(_dot(c_b, g_full), c_b.T) + RIDGE * eye_f
        for i in range(2, nb):
            m = _lower_chol_inv(g_b)
            w = weights[i - 1]   # TODO(synk): weights[nb-1] unused (matches prior stand-in)
            c_b = (1.0 - w) * _dot(m, c_b) + w * cu[i]
            g_b = _dot(_dot(c_b, g_full), c_b.T) + RIDGE * eye_f
        m_final = _lower_chol_inv(g_b)

    # ---- projection / reconstruction ----------------------------------------------
    # subspace rows fm = (m_final @ c_b) @ X are never materialized:
    #   coords = X @ fm^T   = (X X^T) c_b^T m_final^T = g_full @ c_b^T @ m_final^T
    #   recon  = coords @ fm = ((coords @ m_final) @ c_b) @ X   -> one more pass over X
    xbt = _dot(g_full, c_b.T)                        # (T, F)
    coords = _dot(xbt, m_final.T)                    # (T, F)
    coords2 = _dot(coords, m_final)                  # (T, F)
    w_mix = _dot(coords2, c_b)                       # (T, T) row-mixing coefficients
    recon = row_mix(w_mix, xp, tile_d)[:, :d]        # (T, D), lane-dense stores

    weight_penalty = (weight_reference - jnp.sum(jnp.abs(weights))) ** 2
    return recon, weight_penalty


class GrassmannAverageBottleneck:
    def __init__(self, in_frames, out_frames):
        self.out_frames = out_frames
        self.num_blocks = in_frames // out_frames
        # Deterministic parameter init, same as the PyTorch __init__.
        self.weights = jnp.array([1.0 / n for n in range(2, self.num_blocks + 2)],
                                 dtype=jnp.float32)
        self.weight_reference = jnp.sum(self.weights)
        self._fwd = jax.jit(functools.partial(_forward, num_blocks=self.num_blocks))

    def __call__(self, x):
        return self._fwd(x, self.weights, self.weight_reference)


if __name__ == "__main__":
    key = jax.random.PRNGKey(0)
    in_frames, out_frames = 8, 4
    C, H, W = 4, 16, 16
    D = C * H * W  # 1024

    x = jax.random.normal(key, (in_frames, D), dtype=jnp.float32)

    model = GrassmannAverageBottleneck(in_frames, out_frames)
    recon, weight_penalty = model(x)
    recon, weight_penalty = jax.block_until_ready((recon, weight_penalty))

    assert recon.shape == (in_frames, D)
    assert weight_penalty.shape == ()
    assert bool(jnp.all(jnp.isfinite(recon)))
    print("KERNEL_OK")
</pallas_src>

<mosaic_0001>
module attributes {stable_mosaic.version = 11 : i64} {
  func.func @_gram_kernel(%arg0: i32, %arg1: memref<8x1024xf32, #tpu.memory_space<vmem>>, %arg2: memref<8x8xf32, #tpu.memory_space<vmem>>) attributes {dimension_semantics = [#tpu.dimension_semantics<arbitrary>], iteration_bounds = array<i64: 1>, scalar_prefetch = 0 : i64, scratch_operands = 0 : i64, tpu.core_type = #tpu.core_type<tc>, window_params = [{transform_indices = @transform_0, window_bounds = array<i64: 8, 1024>}, {pipeline_mode = #tpu.pipeline_mode<synchronous>, transform_indices = @transform_1, window_bounds = array<i64: 8, 8>}]} {
    %c0_i32 = arith.constant 0 : i32
    %0 = arith.cmpi eq, %arg0, %c0_i32 : i32
    %1 = arith.extui %0 : i1 to i32
    %c0_i32_0 = arith.constant 0 : i32
    %2 = arith.cmpi ne, %1, %c0_i32_0 : i32
    scf.if %2 {
      %cst_6 = arith.constant 0.000000e+00 : f32
      %8 = vector.broadcast %cst_6 : f32 to vector<8x8xf32>
      %c0_7 = arith.constant 0 : index
      %c0_8 = arith.constant 0 : index
      %9 = vector.load %arg2[%c0_7, %c0_8] : memref<8x8xf32, #tpu.memory_space<vmem>>, vector<8x8xf32>
      tpu.vector_store %arg2[%c0_7, %c0_8], %8 {strides = array<i32>} : memref<8x8xf32, #tpu.memory_space<vmem>>, vector<8x8xf32>,
    } else {
    }
    %c0 = arith.constant 0 : index
    %c0_1 = arith.constant 0 : index
    %3 = vector.load %arg1[%c0, %c0_1] : memref<8x1024xf32, #tpu.memory_space<vmem>>, vector<8x1024xf32>
    %c0_2 = arith.constant 0 : index
    %c0_3 = arith.constant 0 : index
    %4 = vector.load %arg2[%c0_2, %c0_3] : memref<8x8xf32, #tpu.memory_space<vmem>>, vector<8x8xf32>
    %cst = arith.constant dense<0.000000e+00> : vector<8x8xf32>
    %5 = tpu.matmul %3, %3, %cst {dimension_numbers = #tpu.dot_dimension_numbers<[1], [1], [0], [0], [0, 0, 1, 0], [], []>} : vector<8x1024xf32>, vector<8x1024xf32>, vector<8x8xf32> -> vector<8x8xf32>
    %6 = arith.addf %4, %5 : vector<8x8xf32>
    %c0_4 = arith.constant 0 : index
    %c0_5 = arith.constant 0 : index
    %7 = vector.load %arg2[%c0_4, %c0_5] : memref<8x8xf32, #tpu.memory_space<vmem>>, vector<8x8xf32>
    tpu.vector_store %arg2[%c0_4, %c0_5], %6 {strides = array<i32>} : memref<8x8xf32, #tpu.memory_space<vmem>>, vector<8x8xf32>,
    return
  }
  func.func @transform_0(%arg0: i32) -> (i32, i32) {
    %c0_i32 = arith.constant 0 : i32
    %c0_i32_0 = arith.constant 0 : i32
    return %c0_i32, %arg0 : i32, i32
  }
  func.func @transform_1(%arg0: i32) -> (i32, i32) {
    %c0_i32 = arith.constant 0 : i32
    %c0_i32_0 = arith.constant 0 : i32
    %c0_i32_1 = arith.constant 0 : i32
    return %c0_i32, %c0_i32_0 : i32, i32
  }
}

module attributes {stable_mosaic.version = 11 : i64} {
  func.func @_rowmix_kernel(%arg0: i32, %arg1: memref<8x8xf32, #tpu.memory_space<vmem>>, %arg2: memref<8x1024xf32, #tpu.memory_space<vmem>>, %arg3: memref<8x1024xf32, #tpu.memory_space<vmem>>) attributes {dimension_semantics = [#tpu.dimension_semantics<parallel>], iteration_bounds = array<i64: 1>, scalar_prefetch = 0 : i64, scratch_operands = 0 : i64, tpu.core_type = #tpu.core_type<tc>, window_params = [{pipeline_mode = #tpu.pipeline_mode<synchronous>, transform_indices = @transform_0, window_bounds = array<i64: 8, 8>}, {transform_indices = @transform_1, window_bounds = array<i64: 8, 1024>}, {transform_indices = @transform_2, window_bounds = array<i64: 8, 1024>}]} {
    %c0 = arith.constant 0 : index
    %c0_0 = arith.constant 0 : index
    %0 = vector.load %arg1[%c0, %c0_0] : memref<8x8xf32, #tpu.memory_space<vmem>>, vector<8x8xf32>
    %c0_1 = arith.constant 0 : index
    %c0_2 = arith.constant 0 : index
    %1 = vector.load %arg2[%c0_1, %c0_2] : memref<8x1024xf32, #tpu.memory_space<vmem>>, vector<8x1024xf32>
    %cst = arith.constant dense<0.000000e+00> : vector<8x1024xf32>
    %2 = tpu.matmul %0, %1, %cst {dimension_numbers = #tpu.dot_dimension_numbers<[1], [0], [0], [1], [0, 0, 1, 1], [], []>} : vector<8x8xf32>, vector<8x1024xf32>, vector<8x1024xf32> -> vector<8x1024xf32>
    %c0_3 = arith.constant 0 : index
    %c0_4 = arith.constant 0 : index
    %3 = vector.load %arg3[%c0_3, %c0_4] : memref<8x1024xf32, #tpu.memory_space<vmem>>, vector<8x1024xf32>
    tpu.vector_store %arg3[%c0_3, %c0_4], %2 {strides = array<i32>} : memref<8x1024xf32, #tpu.memory_space<vmem>>, vector<8x1024xf32>,
    return
  }
  func.func @transform_0(%arg0: i32) -> (i32, i32) {
    %c0_i32 = arith.constant 0 : i32
    %c0_i32_0 = arith.constant 0 : i32
    %c0_i32_1 = arith.constant 0 : i32
    return %c0_i32, %c0_i32_0 : i32, i32
  }
  func.func @transform_1(%arg0: i32) -> (i32, i32) {
    %c0_i32 = arith.constant 0 : i32
    %c0_i32_0 = arith.constant 0 : i32
    return %c0_i32, %arg0 : i32, i32
  }
  func.func @transform_2(%arg0: i32) -> (i32, i32) {
    %c0_i32 = arith.constant 0 : i32
    %c0_i32_0 = arith.constant 0 : i32
    return %c0_i32, %arg0 : i32, i32
  }
}

</mosaic_0001>

<bundles_post_ra>
// kernel: custom-call.7
= control target key start
LH: loop header
LB: loop body
LE: loop exit
PB: predicated region body
PF: predicated region fallthrough
CT: control target
= control target key end

     0   :  { %v176_v0 = vmov 0.0   ;;  %vm38_vm0 = vcmask 7168   ;;  %vm56_vm1 = vcmask 15368   ;;  %vm73_vm2 = vcmask 1047553   ;;  %s193_s0 = inlined_call_operand.vmem [shape: f32[4,4], index: 0, kind: input, shape index: {}]   ;;  %s194_s1 = inlined_call_operand.vmem [shape: f32[4,4], index: 1, kind: output, shape index: {}]  }
   0x1   :  { %37 = vst [vmem:[#allocation2] sm:$0xff] %v176_v0  ;;  %v17_v2 = vld [vmem:[%s193_s0] sm:$0xf]  ;;  %vm74_vm3 = vmand %vm56_vm1, %vm73_vm2  ;;  %vm78_vm4 = vcmask 23568   ;;  %vm95_vm5 = vcmask 1047554   ;;  %vm100_vm7 = vcmask 31768  }
   0x2   :  { %18 = vst [vmem:[#allocation1] sm:$0xf] %v17_v2  ;;  %vm96_vm6 = vmand %vm78_vm4, %vm95_vm5  ;;  %vm117_vm8 = vcmask 1047555  }
   0x3   :  { %vm118_vm9 = vmand %vm100_vm7, %vm117_vm8 }
   0x8   :  { %v39_v1 = vld [vmem:[#allocation2] ss:$0 sm:$0xff] }
   0x9   :  { %v41_v3 = vmul.f32 %v39_v1, %v39_v1  ;;  %v48_v4 = vmul.f32 0.0, %v39_v1  ;;  %v35_v5 = vld [vmem:[#allocation1] sm:$0xf] }
   0xa   :  { %36 = vst [vmem:[#allocation0] sm:$0xf] %v35_v5 }
   0xb   :  { %42 = vadd.xlane.f32.xlu0 %v41_v3 }
   0xf   :  { %49 = vadd.xlane.f32.xlu0 %v48_v4 }
  0x11   :  { %v40_v6 = vld [vmem:[#allocation0] ss:$0 sm:$0xff]  ;;  %v60_v18 = vld [vmem:[#allocation0 + $0x1] ss:$0 sm:$0xff]  ;;  %v82_v30 = vld [vmem:[#allocation0 + $0x2] ss:$0 sm:$0xff] }
  0x12   :  { %v46_v10 = vld [vmem:[#allocation0] sm:$0xff] }
  0x13   :  { %v104_v42 = vld [vmem:[#allocation0 + $0x3] ss:$0 sm:$0xff] }
  0x98   :  { %v43_v7 = vpop.xlane.xlu0 %42 }
  0x99   :  { %v44_v8 = vsub.f32 %v40_v6, %v43_v7 }
  0x9b   :  { %168 = vrsqrt.f32 %v44_v8 }
  0x9c   :  { %v50_v9 = vpop.xlane.xlu0 %49 }
  0x9d   :  { %v51_v11 = vsub.f32 %v46_v10, %v50_v9 }
  0xa5   :  { %v169_v12 = vpop.eup %168 }
  0xa6   :  { %v52_v13 = vmul.f32 %v169_v12, %v51_v11 }
  0xa8   :  { %v53_v14 = vsel %vm38_vm0, %v52_v13, 0.0 }
  0xa9   :  { %55 = vst [vmem:[#allocation2] sm:$0xff] %v53_v14 }
  0xb0   :  { %v58_v15 = vld [vmem:[#allocation2 + $0x1] ss:$0 sm:$0xff] }
  0xb1   :  { %v61_v16 = vmul.f32 %v58_v15, %v58_v15  ;;  %v68_v17 = vmul.f32 %v58_v15, %v53_v14 }
  0xb3   :  { %62 = vadd.xlane.f32.xlu1 %v61_v16 }
  0xb7   :  { %69 = vadd.xlane.f32.xlu1 %v68_v17 }
 0x140   :  { %v63_v19 = vpop.xlane.xlu1 %62 }
 0x141   :  { %v64_v20 = vsub.f32 %v60_v18, %v63_v19 }
 0x143   :  { %170 = vrsqrt.f32 %v64_v20 }
 0x144   :  { %v70_v21 = vpop.xlane.xlu1 %69 }
 0x145   :  { %v71_v22 = vsub.f32 %v46_v10, %v70_v21 }
 0x14d   :  { %v171_v23 = vpop.eup %170 }
 0x14e   :  { %v72_v24 = vmul.f32 %v171_v23, %v71_v22 }
 0x150   :  { %v75_v25 = vsel %vm74_vm3, %v72_v24, 0.0 }
 0x151   :  { %v76_v26 = vadd.f32 %v75_v25, %v53_v14 }
 0x153   :  { %77 = vst [vmem:[#allocation2] sm:$0xff] %v76_v26 }
 0x15a   :  { %v80_v27 = vld [vmem:[#allocation2 + $0x2] ss:$0 sm:$0xff] }
 0x15b   :  { %v90_v28 = vmul.f32 %v80_v27, %v76_v26  ;;  %v83_v29 = vmul.f32 %v80_v27, %v80_v27 }
 0x15d   :  { %91 = vadd.xlane.f32.xlu1 %v90_v28  ;;  %84 = vadd.xlane.f32.xlu0 %v83_v29 }
 0x1ea   :  { %v85_v31 = vpop.xlane.xlu0 %84  ;;  %v92_v33 = vpop.xlane.xlu1 %91 }
 0x1eb   :  { %v86_v32 = vsub.f32 %v82_v30, %v85_v31  ;;  %v93_v34 = vsub.f32 %v46_v10, %v92_v33 }
 0x1ed   :  { %172 = vrsqrt.f32 %v86_v32 }
 0x1f7   :  { %v173_v35 = vpop.eup %172 }
 0x1f8   :  { %v94_v36 = vmul.f32 %v173_v35, %v93_v34 }
 0x1fa   :  { %v97_v37 = vsel %vm96_vm6, %v94_v36, 0.0 }
 0x1fb   :  { %v98_v38 = vadd.f32 %v97_v37, %v76_v26 }
 0x1fd   :  { %99 = vst [vmem:[#allocation2] sm:$0xff] %v98_v38 }
 0x204   :  { %v102_v39 = vld [vmem:[#allocation2 + $0x3] ss:$0 sm:$0xff] }
 0x205   :  { %v112_v40 = vmul.f32 %v102_v39, %v98_v38  ;;  %v105_v41 = vmul.f32 %v102_v39, %v102_v39 }
 0x207   :  { %113 = vadd.xlane.f32.xlu1 %v112_v40  ;;  %106 = vadd.xlane.f32.xlu0 %v105_v41 }
 0x294   :  { %v107_v43 = vpop.xlane.xlu0 %106  ;;  %v114_v45 = vpop.xlane.xlu1 %113 }
 0x295   :  { %v108_v44 = vsub.f32 %v104_v42, %v107_v43  ;;  %v115_v46 = vsub.f32 %v46_v10, %v114_v45 }
 0x297   :  { %174 = vrsqrt.f32 %v108_v44 }
 0x2a1   :  { %v175_v47 = vpop.eup %174 }
 0x2a2   :  { %v116_v48 = vmul.f32 %v175_v47, %v115_v46 }
 0x2a4   :  { %v119_v49 = vsel %vm118_vm9, %v116_v48, 0.0 }
 0x2a5   :  { %v120_v50 = vadd.f32 %v119_v49, %v98_v38 }
 0x2a7   :  { %121 = vst [vmem:[#allocation2] sm:$0xff] %v120_v50 }
 0x2ae   :  { %v125_v51 = vld [vmem:[#allocation2] sm:$0xf] }
 0x2af   :  { %127 = vst [vmem:[#allocation3] sm:$0xf] %v125_v51 }
 0x2b6   :  { %v143_v52 = vld [vmem:[#allocation3] sm:$0xf] }
 0x2b7   :  { %144 = vst [vmem:[%s194_s1] sm:$0xf] %v143_v52 }

// kernel: custom-call.8
= control target key start
LH: loop header
LB: loop body
LE: loop exit
PB: predicated region body
PF: predicated region fallthrough
CT: control target
= control target key end

     0   :  { %v37_v1 = vlaneseq  ;;  %v148_v11 = vmov -1.0   ;;  %s165_s0 = inlined_call_operand.vmem [shape: f32[1,4,4], index: 0, kind: input, shape index: {}]   ;;  %s166_s1 = inlined_call_operand.vmem [shape: f32[1,4,4], index: 1, kind: output, shape index: {}]  }
   0x1   :  { %v17_v0 = vld [vmem:[%s165_s0] sm:$0xf] }
   0x2   :  { %18 = vst [vmem:[#allocation1] sm:$0xf] %v17_v0  ;;  %v38_v3 = vand.u32 127, %v37_v1  ;;  %v41_v4 = vshrl.u32 %v37_v1, 7 }
   0x4   :  { %vm39_vm0 = vcmp.lt.s32.totalorder %v38_v3, 4  ;;  %vm48_vm1 = vcmp.ge.s32.totalorder %v41_v4, %v38_v3  ;;  %vm43_vm2 = vcmp.eq.s32.totalorder %v41_v4, %v38_v3  ;;  %vm62_vm4 = vcmp.eq.s32.totalorder %v38_v3, 0 }
   0x5   :  { %vm49_vm3 = vmand %vm48_vm1, %vm39_vm0  ;;  %vm59_vm5 = vcmp.eq.s32.totalorder %v38_v3, %v41_v4  ;;  %v63_v12 = vsel %vm62_vm4, 1.0, %v148_v11  ;;  %vm70_vm6 = vcmp.eq.s32.totalorder %v38_v3, 1  ;;  %vm80_vm7 = vcmp.eq.s32.totalorder %v38_v3, 2 }
   0x6   :  { %v64_v13 = vsel %vm59_vm5, %v63_v12, 0.0  ;;  %vm90_vm8 = vcmp.eq.s32.totalorder %v38_v3, 3 }
   0x9   :  { %v35_v2 = vld [vmem:[#allocation1] sm:$0xf] }
   0xa   :  { %36 = vst [vmem:[#allocation0] sm:$0xf] %v35_v2 }
  0x11   :  { %v44_v5 = vld [vmem:[#allocation0] sm:$0xff] }
  0x12   :  { %v45_v6 = vsel %vm43_vm2, %v44_v5, 0.0  ;;  %v50_v7 = vsel %vm49_vm3, %v44_v5, 0.0 }
  0x13   :  { %46 = vadd.xlane.f32.xlu0 %v45_v6 }
  0xa0   :  { %v47_v8 = vpop.xlane.xlu0 %46 }
  0xa1   :  { %146 = vrcp.f32 %v47_v8  ;;  %vm97_vm9 = vweird.f32 %v47_v8 }
  0xab   :  { %v147_v9 = vpop.eup %146 }
  0xac   :  { %v52_v10 = vmul.f32 %v147_v9, %v50_v7 }
  0xae   :  { %53 = vst [vmem:[#allocation4] sm:$0xff] %v52_v10 }
  0xb5   :  { %v66_v14 = vld [vmem:[#allocation4 + $0x1] ss:$0 sm:$0xff]  ;;  %v76_v17 = vld [vmem:[#allocation4 + $0x2] ss:$0 sm:$0xff]  ;;  %v86_v22 = vld [vmem:[#allocation4 + $0x3] ss:$0 sm:$0xff] }
  0xb6   :  { %v67_v15 = vxor.u32 2147483648, %v66_v14  ;;  %v77_v19 = vxor.u32 2147483648, %v76_v17  ;;  %v87_v24 = vxor.u32 2147483648, %v86_v22 }
  0xb8   :  { %v71_v16 = vmul.f32 %v67_v15, %v64_v13 }
  0xba   :  { %72 = vadd.xlane.f32.xlu0 %v71_v16 }
 0x147   :  { %v73_v18 = vpop.xlane.xlu0 %72 }
 0x148   :  { %v74_v20 = vsel %vm70_vm6, %v73_v18, %v64_v13 }
 0x149   :  { %v81_v21 = vmul.f32 %v77_v19, %v74_v20 }
 0x14b   :  { %82 = vadd.xlane.f32.xlu1 %v81_v21 }
 0x1d8   :  { %v83_v23 = vpop.xlane.xlu1 %82 }
 0x1d9   :  { %v84_v25 = vsel %vm80_vm7, %v83_v23, %v74_v20 }
 0x1da   :  { %v91_v26 = vmul.f32 %v87_v24, %v84_v25 }
 0x1dc   :  { %92 = vadd.xlane.f32.xlu1 %v91_v26 }
 0x269   :  { %v93_v27 = vpop.xlane.xlu1 %92 }
 0x26a   :  { %v94_v28 = vsel %vm90_vm8, %v93_v27, %v84_v25 }
 0x26b   :  { %v96_v29 = vmul.f32 %v147_v9, %v94_v28 }
 0x26d   :  { %v98_v30 = vsel %vm97_vm9, %v94_v28, %v96_v29 }
 0x26e   :  { %99 = vst [vmem:[#allocation2] sm:$0xff] %v98_v30 }
 0x275   :  { %v103_v31 = vld [vmem:[#allocation2] sm:$0xf] }
 0x276   :  { %105 = vst [vmem:[#allocation3] sm:$0xf] %v103_v31 }
 0x27d   :  { %v121_v32 = vld [vmem:[#allocation3] sm:$0xf] }
 0x27e   :  { %122 = vst [vmem:[%s166_s1] sm:$0xf] %v121_v32 }

// kernel: _forward.2
= control target key start
LH: loop header
LB: loop body
LE: loop exit
PB: predicated region body
PF: predicated region fallthrough
CT: control target
= control target key end

     0   :  { %6 = vsyncpa [#allocation3], 0  ;;  %s349_s6 = smov [#allocation2]   ;;  %s384_s0 = inlined_call_operand.hbm [shape: f32[8,1024], index: 0, kind: input, shape index: {}]   ;;  %s385_s1 = inlined_call_operand.vmem [shape: f32[8,8], index: 1, kind: output, shape index: {}]  }
   0x1   :  { %s13_s7 = sshll.u32 %s349_s6, 4  ;;  %s325_s10 = scalar_lea.hbm %s384_s0, 1024  ;;  %s14_s7 = int_to_ptr.vmem [resolvable:$true] %s13_s7 }
   0x2   :  { %p326_p0 = scmp.ne.s32.totalorder %s384_s0, %s325_s10  ;;  %p329_p1 = scmp.lt.u32.totalorder %s325_s10, %s384_s0 }
   0x4   :  { %p331_p2 = pnand %p329_p1, %p326_p0 }
   0x6   :  { %334 = shalt.err (!%p331_p2)
}
   0x7   :  { %s335_s15 = scalar_lea.vmem %s14_s7, 1024  ;;  %p340_p4 = scmp.lt.s32.totalorder %s14_s7, %s14_s7 }
   0x8   :  { %p336_p3 = scmp.ne.s32.totalorder %s14_s7, %s335_s15  ;;  %p341_p5 = scmp.lt.s32.totalorder %s335_s15, %s335_s15 }
   0xa   :  { %p342_p6 = por %p341_p5, %p340_p4 }
   0xc   :  { %p343_p7 = pnand %p342_p6, %p336_p3 }
   0xe   :  { %346 = shalt.err (!%p343_p7)
}
   0xf   :  { %16 = dma.hbm_to_vmem [thread:$0]  %s384_s0, 1024, %s14_s7, [#allocation3]  }
  0x10   :  { %347 = dma.done.wait [#allocation3], 1024  }
  0x11   :  { %348 = vsyncadd [#allocation3], 4294966272  ;;  %v27_v0 = vld [vmem:[#allocation2 + $0x8] sm:$0xff]  ;;  %v26_v1 = vld [vmem:[#allocation2] sm:$0xff]  ;;  %vm24_vm0 = vcmask 64512   ;;  %v350_v8 = vmov 0.0  }
  0x12   :  { %v29_v2 = vld [vmem:[#allocation2 + $0x18] sm:$0xff]  ;;  %35 = vmatprep.subr.mxu0 %v27_v0  ;;  %v28_v3 = vld [vmem:[#allocation2 + $0x10] sm:$0xff]  ;;  %v31_v4 = vld [vmem:[#allocation2 + $0x28] sm:$0xff]  ;;  %99 = vmatprep.mubr.f32.mxu0 %v27_v0  ;;  %25 = vst.msk [vmem:[%s385_s1] sm:$0xff] %vm24_vm0, %v350_v8 }
  0x13   :  { %105 = vmatprep.subr.mxu1 %v29_v2  ;;  %36 = vmatpush1.xpose.msra.mxu0 %v26_v1  ;;  %v33_v5 = vld [vmem:[#allocation2 + $0x38] sm:$0xff]  ;;  %v30_v6 = vld [vmem:[#allocation2 + $0x20] sm:$0xff]  ;;  %v32_v7 = vld [vmem:[#allocation2 + $0x30] sm:$0xff] }
  0x14   :  { %106 = vmatpush1.xpose.msra.mxu1 %v28_v3  ;;  %169 = vmatprep.mubr.f32.mxu1 %v29_v2 }
  0x15   :  { %175 = vmatprep.subr.mxu0 %v31_v4  ;;  %245 = vmatprep.subr.mxu1 %v33_v5 }
  0x16   :  { %100 = vmatmul.mubr.f32.vlgmr.msra.gmra.mrb[0].mxu0 %v26_v1 }
  0x17   :  { %170 = vmatmul.mubr.f32.vlgmr.msra.gmra.mrb[0].mxu1 %v28_v3  ;;  %176 = vmatpush1.xpose.msra.mxu0 %v30_v6 }
  0x18   :  { %239 = vmatprep.mubr.f32.mxu0 %v31_v4  ;;  %246 = vmatpush1.xpose.msra.mxu1 %v32_v7 }
  0x19   :  { %309 = vmatprep.mubr.f32.mxu1 %v33_v5  ;;  %v34_v18 = vld [vmem:[%s385_s1] sm:$0xff] }
  0x1a   :  { %240 = vmatmul.mubr.f32.vlgmr.msra.gmra.mrb[2].mxu0 %v30_v6 }
  0x1b   :  { %310 = vmatmul.mubr.f32.vlgmr.msra.gmra.mrb[2].mxu1 %v32_v7 }
  0xe9   :  { %v101_v9 = vpop.f32.mrb[0].mxu0 }
  0xea   :  { %v171_v10 = vpop.f32.mrb[0].mxu1  ;;  %v103_v11 = vpop.f32.mrb[1].mxu0 }
  0xeb   :  { %v172_v12 = vadd.f32 %v171_v10, %v101_v9  ;;  %v173_v13 = vpop.f32.mrb[1].mxu1 }
  0xed   :  { %v241_v14 = vpop.f32.mrb[2].mxu0 }
  0xee   :  { %v242_v15 = vadd.f32 %v241_v14, %v172_v12  ;;  %v243_v16 = vpop.f32.mrb[3].mxu0  ;;  %v311_v17 = vpop.f32.mrb[2].mxu1 }
  0xef   :  { %v313_v19 = vpop.f32.mrb[3].mxu1 }
  0xf0   :  { %v312_v20 = vadd.f32 %v311_v17, %v242_v15 }
  0xf2   :  { %v315_v21 = vadd.f32 %v312_v20, %v34_v18 }
  0xf4   :  { %317 = vst.msk [vmem:[%s385_s1] sm:$0xff] %vm24_vm0, %v315_v21 }
  0xf5   :  { %322 = vsyncpa [#allocation3], 1 }

// kernel: _forward.3
= control target key start
LH: loop header
LB: loop body
LE: loop exit
PB: predicated region body
PF: predicated region fallthrough
CT: control target
= control target key end

     0   :  { %vm21_vm0 = vcmask 64512   ;;  %v361_v5 = vmov 0.0   ;;  %s421_s0 = inlined_call_operand.vmem [shape: f32[8,8], index: 0, kind: input, shape index: {}]   ;;  %s422_s1 = inlined_call_operand.vmem [shape: f32[8,1024], index: 1, kind: input, shape index: {}]   ;;  %s423_s2 = inlined_call_operand.hbm [shape: f32[8,1024], index: 2, kind: output, shape index: {}]  }
   0x1   :  { %v14_v0 = vld [vmem:[%s422_s1 + $0x8] sm:$0xff]  ;;  %v16_v1 = vld [vmem:[%s422_s1 + $0x18] sm:$0xff]  ;;  %v13_v2 = vld [vmem:[%s422_s1] sm:$0xff]  ;;  %89 = vmatprep.mubr.f32.mxu0 %v361_v5  ;;  %160 = vmatprep.mubr.f32.mxu1 %v361_v5 }
   0x2   :  { %25 = vmatprep.subr.mxu0 %v14_v0  ;;  %96 = vmatprep.subr.mxu1 %v16_v1  ;;  %v15_v3 = vld [vmem:[%s422_s1 + $0x10] sm:$0xff]  ;;  %v12_v4 = vld [vmem:[%s421_s0] sm:$0xff]  ;;  %v18_v6 = vld [vmem:[%s422_s1 + $0x28] sm:$0xff] }
   0x3   :  { %26 = vmatpush1.msra.mxu0 %v13_v2  ;;  %v20_v7 = vld [vmem:[%s422_s1 + $0x38] sm:$0xff]  ;;  %97 = vmatpush1.msra.mxu1 %v15_v3  ;;  %v17_v8 = vld [vmem:[%s422_s1 + $0x20] sm:$0xff]  ;;  %v19_v9 = vld [vmem:[%s422_s1 + $0x30] sm:$0xff] }
   0x4   :  { %7 = vsyncpa [#allocation3], 0  ;;  %331 = vmatmul.mubr.msk.f32.vlgmr.msra.gmra.mrb[0].mxu0 %vm21_vm0, %v12_v4  ;;  %332 = vmatmul.mubr.msk.f32.vlgmr.msra.gmra.mrb[0].mxu1 %vm21_vm0, %v12_v4  ;;  %s362_s1 = smov [#allocation2]  }
   0x5   :  { %167 = vmatprep.subr.mxu0 %v18_v6  ;;  %238 = vmatprep.subr.mxu1 %v20_v7  ;;  %s323_s26 = sshll.u32 %s362_s1, 4  ;;  %s324_s26 = int_to_ptr.vmem [resolvable:$true] %s323_s26 }
   0x6   :  { %168 = vmatpush1.msra.mxu0 %v17_v8  ;;  %239 = vmatpush1.msra.mxu1 %v19_v9  ;;  %s337_s27 = scalar_lea.vmem %s324_s26, 1024  ;;  %p342_p1 = scmp.lt.s32.totalorder %s324_s26, %s324_s26 }
   0x7   :  { %231 = vmatprep.mubr.f32.mxu0 %v361_v5  ;;  %302 = vmatprep.mubr.f32.mxu1 %v361_v5  ;;  %p338_p0 = scmp.ne.s32.totalorder %s324_s26, %s337_s27  ;;  %p343_p2 = scmp.lt.s32.totalorder %s337_s27, %s337_s27 }
   0x8   :  { %333 = vmatmul.mubr.msk.f32.vlgmr.msra.gmra.mrb[2].mxu0 %vm21_vm0, %v12_v4  ;;  %334 = vmatmul.mubr.msk.f32.vlgmr.msra.gmra.mrb[2].mxu1 %vm21_vm0, %v12_v4 }
   0x9   :  { %p344_p3 = por %p343_p2, %p342_p1 }
   0xb   :  { %p345_p4 = pnand %p344_p3, %p338_p0 }
  0xd7   :  { %v91_v10 = vpop.f32.mrb[0].mxu0  ;;  %v162_v11 = vpop.f32.mrb[0].mxu1 }
  0xd8   :  { %309 = vst [vmem:[#allocation2] sm:$0xff] %v91_v10  ;;  %311 = vst [vmem:[#allocation2 + $0x10] sm:$0xff] %v162_v11  ;;  %v93_v12 = vpop.f32.mrb[1].mxu0  ;;  %v164_v13 = vpop.f32.mrb[1].mxu1 }
  0xd9   :  { %310 = vst [vmem:[#allocation2 + $0x8] sm:$0xff] %v93_v12  ;;  %312 = vst [vmem:[#allocation2 + $0x18] sm:$0xff] %v164_v13 }
  0xdb   :  { %v233_v14 = vpop.f32.mrb[2].mxu0  ;;  %v304_v15 = vpop.f32.mrb[2].mxu1 }
  0xdc   :  { %313 = vst [vmem:[#allocation2 + $0x20] sm:$0xff] %v233_v14  ;;  %315 = vst [vmem:[#allocation2 + $0x30] sm:$0xff] %v304_v15  ;;  %v235_v16 = vpop.f32.mrb[3].mxu0  ;;  %v306_v17 = vpop.f32.mrb[3].mxu1 }
  0xdd   :  { %314 = vst [vmem:[#allocation2 + $0x28] sm:$0xff] %v235_v16  ;;  %316 = vst [vmem:[#allocation2 + $0x38] sm:$0xff] %v306_v17 }
  0xde   :  { %348 = shalt.err (!%p345_p4)
}
  0xdf   :  { %s349_s30 = scalar_lea.hbm %s423_s2, 1024 }
  0xe0   :  { %p350_p5 = scmp.ne.s32.totalorder %s423_s2, %s349_s30  ;;  %p353_p6 = scmp.lt.u32.totalorder %s349_s30, %s423_s2 }
  0xe2   :  { %p355_p7 = pnand %p353_p6, %p350_p5 }
  0xe4   :  { %358 = shalt.err (!%p355_p7)
}
  0xe5   :  { %326 = dma.vmem_to_hbm [thread:$0]  %s324_s26, 1024, %s423_s2, [#allocation3]  }
  0xe6   :  { %359 = dma.done.wait [#allocation3], 1024  }
  0xe7   :  { %360 = vsyncadd [#allocation3], 4294966272 }
  0xe8   :  { %330 = vsyncpa [#allocation3], 1 }

</bundles_post_ra>
